<compile_context>
chip_gen: v5e
topology: v5e:2x2
jax: 0.10.0
libtpu: 0.0.40
codegen_flags: <defaults>
</compile_context>

<pallas_src>
import jax
import jax.numpy as jnp
from jax.experimental import pallas as pl
from jax.experimental.pallas import tpu as pltpu

LANE = 128
ROW = 16          # bf16 packs 16 rows per sublane group


def _round_up(n, m):
    return ((n + m - 1) // m) * m


def _cdiv(a, b):
    return -(-a // b)


# ----------------------------------------------------------------------------
# Kernel
# ----------------------------------------------------------------------------
def safe_mlp_kernel(x_ref, w1_ref, b1_ref, w3_ref, b3_ref, o_ref):
    # Cast the streamed x tile to bf16 just before the MXU (x arrives in its
    # native dtype, so the wrapper does not pre-materialize a bf16 copy).
    x = x_ref[...].astype(jnp.bfloat16)

    # fc1 + tanh: bf16 MXU operands, f32 accumulation / activations.
    # TODO(synk): if profiling shows the 1-wide EUP (tanh) is the binding slot
    # for small in_dim, swap in a clipped VPU polynomial approximation.
    h = jnp.tanh(
        jnp.dot(x, w1_ref[...], preferred_element_type=jnp.float32)
        + b1_ref[...])

    # Per-row ball scale: min(||h||, 0.9) / (||h|| + 1e-8).  Only (tb, 1)
    # elements; approx reciprocal rides the EUP slot for free.
    h_norm = jnp.sqrt(jnp.sum(h * h, axis=1, keepdims=True))
    scale = jnp.minimum(h_norm, 0.9) * pl.reciprocal(h_norm + 1e-8, approx=True)

    # fc_out on the *unscaled* h; the per-row scalar commutes with the matmul,
    # so it is applied to the narrow (tb, out_p) result instead of the wide h.
    y = jnp.dot(h.astype(jnp.bfloat16), w3_ref[...],
                preferred_element_type=jnp.float32)
    o_ref[...] = (scale * y + b3_ref[...]).astype(o_ref.dtype)


# ----------------------------------------------------------------------------
# Parameter preparation (done once, outside the per-call path)
# ----------------------------------------------------------------------------
def prepare_params(params):
    w1, b1, w2, b2, w3, b3 = params
    del w2, b2  # fc2 parameters never reach the output (see module note above)
    in_dim, hid = w1.shape
    out_dim = w3.shape[1]
    hid_p = _round_up(hid, LANE)
    out_p = _round_up(out_dim, LANE)

    w1_p = jnp.zeros((in_dim, hid_p), jnp.bfloat16).at[:, :hid].set(
        w1.astype(jnp.bfloat16))
    b1_p = jnp.zeros((1, hid_p), jnp.float32).at[:, :hid].set(
        jnp.reshape(b1, (1, hid)).astype(jnp.float32))
    w3_p = jnp.zeros((hid_p, out_p), jnp.bfloat16).at[:hid, :out_dim].set(
        w3.astype(jnp.bfloat16))
    b3_p = jnp.zeros((1, out_p), jnp.float32).at[:, :out_dim].set(
        jnp.reshape(b3, (1, out_dim)).astype(jnp.float32))
    return {"w1": w1_p, "b1": b1_p, "w3": w3_p, "b3": b3_p,
            "in_dim": in_dim, "hid": hid, "out_dim": out_dim}


# ----------------------------------------------------------------------------
# VMEM budgeting / tile sizing (generation-aware)
# ----------------------------------------------------------------------------
def _vmem_cap_bytes():
    phys = 64 << 20  # conservative default: v7x per-TensorCore VMEM
    try:
        phys = int(getattr(pltpu.get_tpu_info(), "vmem_capacity_bytes", phys))
    except Exception:
        pass
    # Leave headroom for compiler-internal scratch; never ask for > ~100 MiB
    # even on 128 MiB (v5e/v6e) parts.
    return max(min(phys - (16 << 20), 100 << 20), 16 << 20)


def _vmem_footprint(tb, in_dim, hid_p, out_p, x_itemsize, weight_bufs):
    x_tiles = 2 * tb * in_dim * x_itemsize          # streamed x, double-buffered
    o_tiles = 2 * tb * out_p * 2                    # bf16 out, double-buffered
    weights = weight_bufs * ((in_dim * hid_p + hid_p * out_p) * 2
                             + (hid_p + out_p) * 4)
    live = tb * (in_dim * 2 + hid_p * 4 + hid_p * 2 + out_p * 4)  # x_bf16,h,h_bf16,y
    return x_tiles + o_tiles + weights + 2 * live   # 2x headroom on live values


def _choose_tb(B, in_dim, hid_p, out_p, x_itemsize, block_tb, cap):
    tb = min(_round_up(block_tb, ROW), _round_up(B, ROW))
    if B >= 512:
        # Keep >=4 grid steps so the v7x 2-TC "parallel" split stays balanced,
        # but never below 256 rows (per-step overhead amortization on v5e/v6e).
        tb = min(tb, max(256, _round_up(_cdiv(B, 4), ROW)))
    while tb > ROW and _vmem_footprint(tb, in_dim, hid_p, out_p,
                                       x_itemsize, weight_bufs=1) > cap:
        tb = max(ROW, _round_up(tb // 2, ROW))
    return tb


# ----------------------------------------------------------------------------
# Wrapper
# ----------------------------------------------------------------------------
def safe_optimized_mlp(x, prepped, *, block_tb=512):
    """x: any shape with a leading batch dim; flattened to (B, in_dim)."""
    w1_p, b1_p = prepped["w1"], prepped["b1"]
    w3_p, b3_p = prepped["w3"], prepped["b3"]
    in_dim, out_dim = prepped["in_dim"], prepped["out_dim"]
    hid_p, out_p = w1_p.shape[1], w3_p.shape[1]

    B = x.shape[0]
    x2d = x.reshape(B, -1)
    assert x2d.shape[1] == in_dim, "flattened input width must match fc1"
    x_itemsize = jnp.dtype(x2d.dtype).itemsize

    cap = _vmem_cap_bytes()
    tb = _choose_tb(B, in_dim, hid_p, out_p, x_itemsize, block_tb, cap)
    b_p = _round_up(B, tb)

    # Pad only the batch tail (no dtype conversion; zero copies when B % tb == 0).
    x_p = x2d if b_p == B else jnp.zeros((b_p, in_dim), x2d.dtype).at[:B].set(x2d)

    grid = (b_p // tb,)

    # vmem_limit is computed from the conservative (double-buffered-weights)
    # footprint so it also covers the fallback path; it is a cap, not a
    # reservation, so this is harmless when Buffered(1) is honoured.
    footprint = _vmem_footprint(tb, in_dim, hid_p, out_p, x_itemsize,
                                weight_bufs=2)
    vmem_limit = int(min(max(footprint + (2 << 20), 4 << 20), cap))

    cost = pl.CostEstimate(
        flops=2 * b_p * in_dim * hid_p + 2 * b_p * hid_p * out_p,
        transcendentals=b_p * hid_p,
        bytes_accessed=(b_p * in_dim * x_itemsize
                        + (w1_p.size + w3_p.size) * 2
                        + (b1_p.size + b3_p.size) * 4
                        + b_p * out_p * 2),
    )

    def build(single_buffer_weights):
        if single_buffer_weights:
            # Constant index_map -> the block never changes; one buffer suffices.
            def wspec(shape):
                return pl.BlockSpec(shape, lambda i: (0, 0),
                                    pipeline_mode=pl.Buffered(1))
        else:
            def wspec(shape):
                return pl.BlockSpec(shape, lambda i: (0, 0))
        return pl.pallas_call(
            safe_mlp_kernel,
            out_shape=jax.ShapeDtypeStruct((b_p, out_p), jnp.bfloat16),
            grid_spec=pltpu.PrefetchScalarGridSpec(
                num_scalar_prefetch=0,
                grid=grid,
                in_specs=[
                    pl.BlockSpec((tb, in_dim), lambda i: (i, 0)),  # streamed x
                    wspec((in_dim, hid_p)),                        # resident W1
                    wspec((1, hid_p)),                             # resident b1
                    wspec((hid_p, out_p)),                         # resident W3
                    wspec((1, out_p)),                             # resident b3
                ],
                out_specs=pl.BlockSpec((tb, out_p), lambda i: (i, 0)),
            ),
            compiler_params=pltpu.CompilerParams(
                dimension_semantics=("parallel",),
                vmem_limit_bytes=vmem_limit,
            ),
            cost_estimate=cost,
        )

    try:
        out = jax.block_until_ready(build(True)(x_p, w1_p, b1_p, w3_p, b3_p))
    except Exception:
        # Fallback for JAX builds without BlockSpec pipeline_mode / Buffered(1).
        out = jax.block_until_ready(build(False)(x_p, w1_p, b1_p, w3_p, b3_p))

    return out[:B, :out_dim].astype(jnp.float32)


# ----------------------------------------------------------------------------
# Reference (pure JAX, f32) and initialization matching the PyTorch module
# ----------------------------------------------------------------------------
def xavier_uniform(key, fan_in, fan_out, gain=0.5):
    # Same distribution as PyTorch xavier_uniform_ on the (out, in) weight,
    # stored pre-transposed as (in_features, out_features).
    limit = gain * (6.0 / (fan_in + fan_out)) ** 0.5
    return jax.random.uniform(key, (fan_in, fan_out), dtype=jnp.float32,
                              minval=-limit, maxval=limit)


def init_params(key, in_dim, hid, out_dim):
    k1, k2, k3 = jax.random.split(key, 3)
    w1 = xavier_uniform(k1, in_dim, hid)
    w2 = xavier_uniform(k2, hid, hid)       # module fidelity (dead in forward)
    w3 = xavier_uniform(k3, hid, out_dim)
    b1 = jnp.zeros((1, hid), jnp.float32)
    b2 = jnp.zeros((1, hid), jnp.float32)
    b3 = jnp.zeros((1, out_dim), jnp.float32)
    return (w1, b1, w2, b2, w3, b3)


def reference_forward(x, params):
    """Pure-JAX f32 reference of the PyTorch forward (except-branch semantics)."""
    w1, b1, w2, b2, w3, b3 = params
    B = x.shape[0]
    x2d = x.reshape(B, -1).astype(jnp.float32)
    h = jnp.tanh(x2d @ w1 + b1)
    h_norm = jnp.sqrt(jnp.sum(h * h, axis=1, keepdims=True))
    h = h * jnp.minimum(h_norm, 0.9) / (h_norm + 1e-8)
    return h @ w3 + b3


if __name__ == "__main__":
    # Module-default shapes: in_dim=784 (1x28x28), hid=128, out_dim=10.
    # B=16 is a ROW multiple, so x is streamed with zero wrapper-side copies;
    # in_dim=784 exercises the full-extent (non-128-multiple) contraction and
    # out_dim=10 exercises the lane-dense output padding.
    B, C, H, W = 16, 1, 28, 28
    in_dim, hid, out_dim = C * H * W, 128, 10

    key = jax.random.PRNGKey(0)
    kx, kp = jax.random.split(key)
    x = jax.random.normal(kx, (B, C, H, W), dtype=jnp.float32)
    params = init_params(kp, in_dim, hid, out_dim)
    prepped = prepare_params(params)

    out = jax.block_until_ready(safe_optimized_mlp(x, prepped))
    ref = reference_forward(x, params)

    assert out.shape == (B, out_dim)
    # Tolerance covers bf16 MXU operands, the bf16 output store, and the
    # approx-EUP reciprocal vs. the all-f32 reference.
    err = float(jnp.max(jnp.abs(out - ref)))
    assert err < 2e-2, f"max abs err {err}"
    print("KERNEL_OK")
</pallas_src>

<mosaic_0001>
module attributes {stable_mosaic.version = 11 : i64} {
  func.func @safe_mlp_kernel(%arg0: i32, %arg1: memref<16x784xf32, #tpu.memory_space<vmem>>, %arg2: memref<784x128xbf16, #tpu.memory_space<vmem>>, %arg3: memref<1x128xf32, #tpu.memory_space<vmem>>, %arg4: memref<128x128xbf16, #tpu.memory_space<vmem>>, %arg5: memref<1x128xf32, #tpu.memory_space<vmem>>, %arg6: memref<16x128xbf16, #tpu.memory_space<vmem>>) attributes {dimension_semantics = [#tpu.dimension_semantics<parallel>], iteration_bounds = array<i64: 1>, scalar_prefetch = 0 : i64, scratch_operands = 0 : i64, tpu.core_type = #tpu.core_type<tc>, window_params = [{transform_indices = @transform_0, window_bounds = array<i64: 16, 784>}, {pipeline_mode = #tpu.pipeline_mode<synchronous>, transform_indices = @transform_1, window_bounds = array<i64: 784, 128>}, {pipeline_mode = #tpu.pipeline_mode<synchronous>, transform_indices = @transform_2, window_bounds = array<i64: 1, 128>}, {pipeline_mode = #tpu.pipeline_mode<synchronous>, transform_indices = @transform_3, window_bounds = array<i64: 128, 128>}, {pipeline_mode = #tpu.pipeline_mode<synchronous>, transform_indices = @transform_4, window_bounds = array<i64: 1, 128>}, {transform_indices = @transform_5, window_bounds = array<i64: 16, 128>}]} {
    %c0 = arith.constant 0 : index
    %c0_0 = arith.constant 0 : index
    %0 = vector.load %arg1[%c0, %c0_0] : memref<16x784xf32, #tpu.memory_space<vmem>>, vector<16x784xf32>
    %1 = arith.truncf %0 : vector<16x784xf32> to vector<16x784xbf16>
    %c0_1 = arith.constant 0 : index
    %c0_2 = arith.constant 0 : index
    %2 = vector.load %arg2[%c0_1, %c0_2] : memref<784x128xbf16, #tpu.memory_space<vmem>>, vector<784x128xbf16>
    %cst = arith.constant dense<0.000000e+00> : vector<16x128xf32>
    %3 = tpu.matmul %1, %2, %cst {dimension_numbers = #tpu.dot_dimension_numbers<[1], [0], [0], [1], [0, 0, 1, 1], [], []>} : vector<16x784xbf16>, vector<784x128xbf16>, vector<16x128xf32> -> vector<16x128xf32>
    %c0_3 = arith.constant 0 : index
    %c0_4 = arith.constant 0 : index
    %4 = vector.load %arg3[%c0_3, %c0_4] : memref<1x128xf32, #tpu.memory_space<vmem>>, vector<1x128xf32>
    %5 = vector.broadcast %4 : vector<1x128xf32> to vector<16x128xf32>
    %6 = arith.addf %3, %5 : vector<16x128xf32>
    %7 = math.tanh %6 : vector<16x128xf32>
    %8 = arith.mulf %7, %7 : vector<16x128xf32>
    %cst_5 = arith.constant dense<0.000000e+00> : vector<16xf32>
    %9 = vector.multi_reduction <add>, %8, %cst_5 [1] : vector<16x128xf32> to vector<16xf32>
    %10 = vector.shape_cast %9 : vector<16xf32> to vector<16x1xf32>
    %11 = math.sqrt %10 : vector<16x1xf32>
    %cst_6 = arith.constant 0.899999976 : f32
    %12 = vector.broadcast %cst_6 : f32 to vector<16x1xf32>
    %13 = arith.minimumf %11, %12 : vector<16x1xf32>
    %cst_7 = arith.constant 9.99999993E-9 : f32
    %14 = vector.broadcast %cst_7 : f32 to vector<16x1xf32>
    %15 = arith.addf %11, %14 : vector<16x1xf32>
    %16 = tpu.reciprocal %15 {approx = true} : vector<16x1xf32> -> vector<16x1xf32>
    %17 = arith.mulf %13, %16 : vector<16x1xf32>
    %18 = arith.truncf %7 : vector<16x128xf32> to vector<16x128xbf16>
    %c0_8 = arith.constant 0 : index
    %c0_9 = arith.constant 0 : index
    %19 = vector.load %arg4[%c0_8, %c0_9] : memref<128x128xbf16, #tpu.memory_space<vmem>>, vector<128x128xbf16>
    %cst_10 = arith.constant dense<0.000000e+00> : vector<16x128xf32>
    %20 = tpu.matmul %18, %19, %cst_10 {dimension_numbers = #tpu.dot_dimension_numbers<[1], [0], [0], [1], [0, 0, 1, 1], [], []>} : vector<16x128xbf16>, vector<128x128xbf16>, vector<16x128xf32> -> vector<16x128xf32>
    %21 = vector.broadcast %17 : vector<16x1xf32> to vector<16x128xf32>
    %22 = arith.mulf %21, %20 : vector<16x128xf32>
    %c0_11 = arith.constant 0 : index
    %c0_12 = arith.constant 0 : index
    %23 = vector.load %arg5[%c0_11, %c0_12] : memref<1x128xf32, #tpu.memory_space<vmem>>, vector<1x128xf32>
    %24 = vector.broadcast %23 : vector<1x128xf32> to vector<16x128xf32>
    %25 = arith.addf %22, %24 : vector<16x128xf32>
    %26 = arith.truncf %25 : vector<16x128xf32> to vector<16x128xbf16>
    %c0_13 = arith.constant 0 : index
    %c0_14 = arith.constant 0 : index
    %27 = vector.load %arg6[%c0_13, %c0_14] : memref<16x128xbf16, #tpu.memory_space<vmem>>, vector<16x128xbf16>
    tpu.vector_store %arg6[%c0_13, %c0_14], %26 {strides = array<i32>} : memref<16x128xbf16, #tpu.memory_space<vmem>>, vector<16x128xbf16>,
    return
  }
  func.func @transform_0(%arg0: i32) -> (i32, i32) {
    %c0_i32 = arith.constant 0 : i32
    %c0_i32_0 = arith.constant 0 : i32
    return %arg0, %c0_i32 : i32, i32
  }
  func.func @transform_1(%arg0: i32) -> (i32, i32) {
    %c0_i32 = arith.constant 0 : i32
    %c0_i32_0 = arith.constant 0 : i32
    %c0_i32_1 = arith.constant 0 : i32
    return %c0_i32, %c0_i32_0 : i32, i32
  }
  func.func @transform_2(%arg0: i32) -> (i32, i32) {
    %c0_i32 = arith.constant 0 : i32
    %c0_i32_0 = arith.constant 0 : i32
    %c0_i32_1 = arith.constant 0 : i32
    return %c0_i32, %c0_i32_0 : i32, i32
  }
  func.func @transform_3(%arg0: i32) -> (i32, i32) {
    %c0_i32 = arith.constant 0 : i32
    %c0_i32_0 = arith.constant 0 : i32
    %c0_i32_1 = arith.constant 0 : i32
    return %c0_i32, %c0_i32_0 : i32, i32
  }
  func.func @transform_4(%arg0: i32) -> (i32, i32) {
    %c0_i32 = arith.constant 0 : i32
    %c0_i32_0 = arith.constant 0 : i32
    %c0_i32_1 = arith.constant 0 : i32
    return %c0_i32, %c0_i32_0 : i32, i32
  }
  func.func @transform_5(%arg0: i32) -> (i32, i32) {
    %c0_i32 = arith.constant 0 : i32
    %c0_i32_0 = arith.constant 0 : i32
    return %arg0, %c0_i32 : i32, i32
  }
}

module attributes {stable_mosaic.version = 11 : i64} {
  func.func @safe_mlp_kernel(%arg0: i32, %arg1: memref<16x784xf32, #tpu.memory_space<vmem>>, %arg2: memref<784x128xbf16, #tpu.memory_space<vmem>>, %arg3: memref<1x128xf32, #tpu.memory_space<vmem>>, %arg4: memref<128x128xbf16, #tpu.memory_space<vmem>>, %arg5: memref<1x128xf32, #tpu.memory_space<vmem>>, %arg6: memref<16x128xbf16, #tpu.memory_space<vmem>>) attributes {dimension_semantics = [#tpu.dimension_semantics<parallel>], iteration_bounds = array<i64: 1>, scalar_prefetch = 0 : i64, scratch_operands = 0 : i64, tpu.core_type = #tpu.core_type<tc>, window_params = [{transform_indices = @transform_0, window_bounds = array<i64: 16, 784>}, {pipeline_mode = #tpu.pipeline_mode<synchronous>, transform_indices = @transform_1, window_bounds = array<i64: 784, 128>}, {pipeline_mode = #tpu.pipeline_mode<synchronous>, transform_indices = @transform_2, window_bounds = array<i64: 1, 128>}, {pipeline_mode = #tpu.pipeline_mode<synchronous>, transform_indices = @transform_3, window_bounds = array<i64: 128, 128>}, {pipeline_mode = #tpu.pipeline_mode<synchronous>, transform_indices = @transform_4, window_bounds = array<i64: 1, 128>}, {transform_indices = @transform_5, window_bounds = array<i64: 16, 128>}]} {
    %c0 = arith.constant 0 : index
    %c0_0 = arith.constant 0 : index
    %0 = vector.load %arg1[%c0, %c0_0] : memref<16x784xf32, #tpu.memory_space<vmem>>, vector<16x784xf32>
    %1 = arith.truncf %0 : vector<16x784xf32> to vector<16x784xbf16>
    %c0_1 = arith.constant 0 : index
    %c0_2 = arith.constant 0 : index
    %2 = vector.load %arg2[%c0_1, %c0_2] : memref<784x128xbf16, #tpu.memory_space<vmem>>, vector<784x128xbf16>
    %cst = arith.constant dense<0.000000e+00> : vector<16x128xf32>
    %3 = tpu.matmul %1, %2, %cst {dimension_numbers = #tpu.dot_dimension_numbers<[1], [0], [0], [1], [0, 0, 1, 1], [], []>} : vector<16x784xbf16>, vector<784x128xbf16>, vector<16x128xf32> -> vector<16x128xf32>
    %c0_3 = arith.constant 0 : index
    %c0_4 = arith.constant 0 : index
    %4 = vector.load %arg3[%c0_3, %c0_4] : memref<1x128xf32, #tpu.memory_space<vmem>>, vector<1x128xf32>
    %5 = vector.broadcast %4 : vector<1x128xf32> to vector<16x128xf32>
    %6 = arith.addf %3, %5 : vector<16x128xf32>
    %7 = math.tanh %6 : vector<16x128xf32>
    %8 = arith.mulf %7, %7 : vector<16x128xf32>
    %cst_5 = arith.constant dense<0.000000e+00> : vector<16xf32>
    %9 = vector.multi_reduction <add>, %8, %cst_5 [1] : vector<16x128xf32> to vector<16xf32>
    %10 = vector.shape_cast %9 : vector<16xf32> to vector<16x1xf32>
    %11 = math.sqrt %10 : vector<16x1xf32>
    %cst_6 = arith.constant 0.899999976 : f32
    %12 = vector.broadcast %cst_6 : f32 to vector<16x1xf32>
    %13 = arith.minimumf %11, %12 : vector<16x1xf32>
    %cst_7 = arith.constant 9.99999993E-9 : f32
    %14 = vector.broadcast %cst_7 : f32 to vector<16x1xf32>
    %15 = arith.addf %11, %14 : vector<16x1xf32>
    %16 = tpu.reciprocal %15 {approx = true} : vector<16x1xf32> -> vector<16x1xf32>
    %17 = arith.mulf %13, %16 : vector<16x1xf32>
    %18 = arith.truncf %7 : vector<16x128xf32> to vector<16x128xbf16>
    %c0_8 = arith.constant 0 : index
    %c0_9 = arith.constant 0 : index
    %19 = vector.load %arg4[%c0_8, %c0_9] : memref<128x128xbf16, #tpu.memory_space<vmem>>, vector<128x128xbf16>
    %cst_10 = arith.constant dense<0.000000e+00> : vector<16x128xf32>
    %20 = tpu.matmul %18, %19, %cst_10 {dimension_numbers = #tpu.dot_dimension_numbers<[1], [0], [0], [1], [0, 0, 1, 1], [], []>} : vector<16x128xbf16>, vector<128x128xbf16>, vector<16x128xf32> -> vector<16x128xf32>
    %21 = vector.broadcast %17 : vector<16x1xf32> to vector<16x128xf32>
    %22 = arith.mulf %21, %20 : vector<16x128xf32>
    %c0_11 = arith.constant 0 : index
    %c0_12 = arith.constant 0 : index
    %23 = vector.load %arg5[%c0_11, %c0_12] : memref<1x128xf32, #tpu.memory_space<vmem>>, vector<1x128xf32>
    %24 = vector.broadcast %23 : vector<1x128xf32> to vector<16x128xf32>
    %25 = arith.addf %22, %24 : vector<16x128xf32>
    %26 = arith.truncf %25 : vector<16x128xf32> to vector<16x128xbf16>
    %c0_13 = arith.constant 0 : index
    %c0_14 = arith.constant 0 : index
    %27 = vector.load %arg6[%c0_13, %c0_14] : memref<16x128xbf16, #tpu.memory_space<vmem>>, vector<16x128xbf16>
    tpu.vector_store %arg6[%c0_13, %c0_14], %26 {strides = array<i32>} : memref<16x128xbf16, #tpu.memory_space<vmem>>, vector<16x128xbf16>,
    return
  }
  func.func @transform_0(%arg0: i32) -> (i32, i32) {
    %c0_i32 = arith.constant 0 : i32
    %c0_i32_0 = arith.constant 0 : i32
    return %arg0, %c0_i32 : i32, i32
  }
  func.func @transform_1(%arg0: i32) -> (i32, i32) {
    %c0_i32 = arith.constant 0 : i32
    %c0_i32_0 = arith.constant 0 : i32
    %c0_i32_1 = arith.constant 0 : i32
    return %c0_i32, %c0_i32_0 : i32, i32
  }
  func.func @transform_2(%arg0: i32) -> (i32, i32) {
    %c0_i32 = arith.constant 0 : i32
    %c0_i32_0 = arith.constant 0 : i32
    %c0_i32_1 = arith.constant 0 : i32
    return %c0_i32, %c0_i32_0 : i32, i32
  }
  func.func @transform_3(%arg0: i32) -> (i32, i32) {
    %c0_i32 = arith.constant 0 : i32
    %c0_i32_0 = arith.constant 0 : i32
    %c0_i32_1 = arith.constant 0 : i32
    return %c0_i32, %c0_i32_0 : i32, i32
  }
  func.func @transform_4(%arg0: i32) -> (i32, i32) {
    %c0_i32 = arith.constant 0 : i32
    %c0_i32_0 = arith.constant 0 : i32
    %c0_i32_1 = arith.constant 0 : i32
    return %c0_i32, %c0_i32_0 : i32, i32
  }
  func.func @transform_5(%arg0: i32) -> (i32, i32) {
    %c0_i32 = arith.constant 0 : i32
    %c0_i32_0 = arith.constant 0 : i32
    return %arg0, %c0_i32 : i32, i32
  }
}

</mosaic_0001>

<bundles_post_ra>
// kernel: tpu_custom_call.1
= control target key start
LH: loop header
LB: loop body
LE: loop exit
PB: predicated region body
PF: predicated region fallthrough
CT: control target
= control target key end

     0   :  { %10 = vsyncpa [#allocation3], 0  ;;  %s1219_s0 = inlined_call_operand.hbm [shape: f32[16,784], index: 0, kind: input, shape index: {}]   ;;  %s1220_s1 = inlined_call_operand.hbm [shape: bf16[784,128], index: 1, kind: input, shape index: {}]   ;;  %s1221_s2 = inlined_call_operand.vmem [shape: f32[1,128], index: 2, kind: input, shape index: {}]   ;;  %s1222_s3 = inlined_call_operand.hbm [shape: bf16[128,128], index: 3, kind: input, shape index: {}]   ;;  %s1223_s4 = inlined_call_operand.vmem [shape: f32[1,128], index: 4, kind: input, shape index: {}]   ;;  %s1224_s5 = inlined_call_operand.hbm [shape: bf16[16,128], index: 5, kind: output, shape index: {}]  }
   0x1   :  { %11 = vsyncpa [#allocation6], 0  ;;  %s30_s20 = sshll.u32 %s1220_s1, 4  ;;  %s31_s20 = int_to_ptr.hbm [resolvable:$true] %s30_s20 }
   0x2   :  { %12 = vsyncpa [#allocation4], 0  ;;  %s1154_s21 = smov [#allocation5]   ;;  %s17_s25 = sshll.u32 %s1219_s0, 4  ;;  %s18_s25 = int_to_ptr.hbm [resolvable:$true] %s17_s25 }
   0x3   :  { %s32_s22 = sshll.u32 %s1154_s21, 4  ;;  %s1155_s26 = smov 64   ;;  %s33_s22 = int_to_ptr.vmem [resolvable:$true] %s32_s22 }
   0x4   :  { %s1156_s27 = smov 4   ;;  %s1157_s28 = smov [#allocation2]  }
   0x5   :  { %38 = dma.hbm_to_vmem [thread:$0]  %s31_s20, 6272, %s33_s22, [#allocation6], %s1155_s26, %s1155_s26, %s1156_s27  }
   0x6   :  { %s19_s29 = sshll.u32 %s1157_s28, 4  ;;  %s1158_s1 = smov 896   ;;  %s20_s29 = int_to_ptr.vmem [resolvable:$true] %s19_s29 }
   0x7   :  { %s1159_s30 = smov 56   ;;  %s45_s8 = sshll.u32 %s1222_s3, 4  ;;  %s46_s8 = int_to_ptr.hbm [resolvable:$true] %s45_s8 }
   0x8   :  { %25 = dma.hbm_to_vmem [thread:$0]  %s18_s25, 1792, %s20_s29, [#allocation3], %s1158_s1, %s1158_s1, %s1159_s30  }
   0x9   :  { %s1160_s9 = smov [#allocation7]  }
   0xa   :  { %s47_s0 = sshll.u32 %s1160_s9, 4  ;;  %s48_s0 = int_to_ptr.vmem [resolvable:$true] %s47_s0 }
   0xb   :  { %53 = dma.hbm_to_vmem [thread:$0]  %s46_s8, 1024, %s48_s0, [#allocation6], %s1155_s26, %s1155_s26, %s1156_s27  }
   0xc   :  { %1148 = dma.done.wait [#allocation3], 1792  }
   0xd   :  { %1149 = vsyncadd [#allocation3], 4294965504 }
   0xe   :  { %1150 = dma.done.wait [#allocation6], 7296  }
   0xf   :  { %1151 = vsyncadd [#allocation6], 4294960000  ;;  %v975_v0 = vld [vmem:[#allocation5 + $0x38] sm:$0xff]  ;;  %v974_v4 = vld [vmem:[#allocation5 + $0x30] sm:$0xff]  ;;  %vm486_vm0 = vcmask 130048   ;;  %s1161_s12 = smov [#allocation8]  }
  0x10   :  { %v983_v1 = vld [vmem:[#allocation5 + $0x78] sm:$0xff]  ;;  %490 = vmatpush.bf16.msra.mxu0 %v975_v0  ;;  %v982_v5 = vld [vmem:[#allocation5 + $0x70] sm:$0xff]  ;;  %v973_v8 = vld [vmem:[#allocation5 + $0x28] sm:$0xff]  ;;  %s723_s13 = sshll.u32 %s1161_s12, 4  ;;  %s725_s16 = sshll.u32 %s1224_s5, 4  ;;  %s724_s13 = int_to_ptr.vmem [resolvable:$true] %s723_s13  ;;  %s726_s16 = int_to_ptr.hbm [resolvable:$true] %s725_s16 }
  0x11   :  { %v991_v2 = vld [vmem:[#allocation5 + $0xb8] sm:$0xff]  ;;  %504 = vmatpush.bf16.msra.mxu1 %v983_v1  ;;  %v990_v6 = vld [vmem:[#allocation5 + $0xb0] sm:$0xff]  ;;  %v981_v9 = vld [vmem:[#allocation5 + $0x68] sm:$0xff] }
  0x12   :  { %v999_v3 = vld [vmem:[#allocation5 + $0xf8] sm:$0xff]  ;;  %518 = vmatpush.bf16.msra.mxu2 %v991_v2  ;;  %v998_v7 = vld [vmem:[#allocation5 + $0xf0] sm:$0xff]  ;;  %v989_v10 = vld [vmem:[#allocation5 + $0xa8] sm:$0xff] }
  0x13   :  { %532 = vmatpush.bf16.msra.mxu3 %v999_v3  ;;  %v997_v11 = vld [vmem:[#allocation5 + $0xe8] sm:$0xff]  ;;  %v972_v12 = vld [vmem:[#allocation5 + $0x20] sm:$0xff]  ;;  %v971_v16 = vld [vmem:[#allocation5 + $0x18] sm:$0xff] }
  0x14   :  { %491 = vmatpush.bf16.msra.mxu0 %v974_v4  ;;  %v980_v13 = vld [vmem:[#allocation5 + $0x60] sm:$0xff]  ;;  %v979_v17 = vld [vmem:[#allocation5 + $0x58] sm:$0xff]  ;;  %v970_v20 = vld [vmem:[#allocation5 + $0x10] sm:$0xff] }
  0x15   :  { %505 = vmatpush.bf16.msra.mxu1 %v982_v5  ;;  %v988_v14 = vld [vmem:[#allocation5 + $0xa0] sm:$0xff]  ;;  %v987_v18 = vld [vmem:[#allocation5 + $0x98] sm:$0xff]  ;;  %v978_v21 = vld [vmem:[#allocation5 + $0x50] sm:$0xff] }
  0x16   :  { %519 = vmatpush.bf16.msra.mxu2 %v990_v6  ;;  %v996_v15 = vld [vmem:[#allocation5 + $0xe0] sm:$0xff]  ;;  %v995_v19 = vld [vmem:[#allocation5 + $0xd8] sm:$0xff]  ;;  %v986_v22 = vld [vmem:[#allocation5 + $0x90] sm:$0xff] }
  0x17   :  { %533 = vmatpush.bf16.msra.mxu3 %v998_v7  ;;  %v994_v23 = vld [vmem:[#allocation5 + $0xd0] sm:$0xff]  ;;  %v969_v24 = vld [vmem:[#allocation5 + $0x8] sm:$0xff]  ;;  %v968_v28 = vld [vmem:[#allocation5] sm:$0xff] }
  0x18   :  { %492 = vmatpush.bf16.msra.mxu0 %v973_v8  ;;  %v977_v25 = vld [vmem:[#allocation5 + $0x48] sm:$0xff]  ;;  %v976_v29 = vld [vmem:[#allocation5 + $0x40] sm:$0xff]  ;;  %v69_v30 = vld [vmem:[#allocation2] sm:$0xff] }
  0x19   :  { %506 = vmatpush.bf16.msra.mxu1 %v981_v9  ;;  %v985_v26 = vld [vmem:[#allocation5 + $0x88] sm:$0xff]  ;;  %v70_v32 = vld [vmem:[#allocation2 + $0x8] sm:$0xff]  ;;  %v77_v33 = vld [vmem:[#allocation2 + $0x40] sm:$0xff] }
  0x1a   :  { %520 = vmatpush.bf16.msra.mxu2 %v989_v10  ;;  %v993_v27 = vld [vmem:[#allocation5 + $0xc8] sm:$0xff]  ;;  %v1007_v34 = vld [vmem:[#allocation5 + $0x138] sm:$0xff]  ;;  %v984_v36 = vld [vmem:[#allocation5 + $0x80] sm:$0xff]  ;;  %v84_v43 = vpack.c.bf16 %v77_v33, %v70_v32 }
  0x1b   :  { %534 = vmatpush.bf16.msra.mxu3 %v997_v11  ;;  %v76_v31 = vld [vmem:[#allocation2 + $0x38] sm:$0xff]  ;;  %v1015_v35 = vld [vmem:[#allocation5 + $0x178] sm:$0xff]  ;;  %v992_v37 = vld [vmem:[#allocation5 + $0xc0] sm:$0xff] }
  0x1c   :  { %493 = vmatpush.bf16.msra.mxu0 %v972_v12  ;;  %v71_v38 = vld [vmem:[#allocation2 + $0x10] sm:$0xff]  ;;  %v78_v39 = vld [vmem:[#allocation2 + $0x48] sm:$0xff]  ;;  %v83_v40 = vpack.c.bf16 %v76_v31, %v69_v30  ;;  %v72_v41 = vld [vmem:[#allocation2 + $0x18] sm:$0xff] }
  0x1d   :  { %507 = vmatpush.bf16.msra.mxu1 %v980_v13  ;;  %v79_v42 = vld [vmem:[#allocation2 + $0x50] sm:$0xff]  ;;  %v1006_v45 = vld [vmem:[#allocation5 + $0x130] sm:$0xff]  ;;  %v85_v47 = vpack.c.bf16 %v78_v39, %v71_v38  ;;  %v1005_v49 = vld [vmem:[#allocation5 + $0x128] sm:$0xff] }
  0x1e   :  { %521 = vmatpush.bf16.msra.mxu2 %v988_v14  ;;  %v1016_v44 = vld [vmem:[#allocation5 + $0x180] sm:$0xff]  ;;  %v1014_v46 = vld [vmem:[#allocation5 + $0x170] sm:$0xff]  ;;  %v86_v48 = vpack.c.bf16 %v79_v42, %v72_v41  ;;  %v1013_v50 = vld [vmem:[#allocation5 + $0x168] sm:$0xff] }
  0x1f   :  { %535 = vmatpush.bf16.msra.mxu3 %v996_v15  ;;  %v1004_v51 = vld [vmem:[#allocation5 + $0x120] sm:$0xff]  ;;  %v1003_v53 = vld [vmem:[#allocation5 + $0x118] sm:$0xff]  ;;  %v1002_v57 = vld [vmem:[#allocation5 + $0x110] sm:$0xff] }
  0x20   :  { %494 = vmatpush.bf16.msra.mxu0 %v971_v16  ;;  %v1012_v52 = vld [vmem:[#allocation5 + $0x160] sm:$0xff]  ;;  %v1011_v54 = vld [vmem:[#allocation5 + $0x158] sm:$0xff]  ;;  %v1010_v58 = vld [vmem:[#allocation5 + $0x150] sm:$0xff] }
  0x21   :  { %508 = vmatpush.bf16.msra.mxu1 %v979_v17  ;;  %v75_v55 = vld [vmem:[#allocation2 + $0x30] sm:$0xff]  ;;  %v82_v56 = vld [vmem:[#allocation2 + $0x68] sm:$0xff]  ;;  %v1001_v60 = vld [vmem:[#allocation5 + $0x108] sm:$0xff] }
  0x22   :  { %522 = vmatpush.bf16.msra.mxu2 %v987_v18  ;;  %v89_v59 = vpack.c.bf16 %v82_v56, %v75_v55  ;;  %v1009_v61 = vld [vmem:[#allocation5 + $0x148] sm:$0xff]  ;;  %v1000_v62 = vld [vmem:[#allocation5 + $0x100] sm:$0xff]  ;;  %v73_v0 = vld [vmem:[#allocation2 + $0x20] sm:$0xff] }
  0x23   :  { %536 = vmatpush.bf16.msra.mxu3 %v995_v19  ;;  %v1008_v63 = vld [vmem:[#allocation5 + $0x140] sm:$0xff]  ;;  %v80_v1 = vld [vmem:[#allocation2 + $0x58] sm:$0xff]  ;;  %v74_v2 = vld [vmem:[#allocation2 + $0x28] sm:$0xff] }
  0x24   :  { %495 = vmatpush.bf16.msra.mxu0 %v970_v20  ;;  %v81_v3 = vld [vmem:[#allocation2 + $0x60] sm:$0xff]  ;;  %v87_v4 = vpack.c.bf16 %v80_v1, %v73_v0  ;;  %v1024_v6 = vld [vmem:[#allocation7 + $0x38] sm:$0xff]  ;;  %v1023_v7 = vld [vmem:[#allocation7 + $0x30] sm:$0xff] }
  0x25   :  { %509 = vmatpush.bf16.msra.mxu1 %v978_v21  ;;  %v88_v5 = vpack.c.bf16 %v81_v3, %v74_v2  ;;  %v1022_v8 = vld [vmem:[#allocation7 + $0x28] sm:$0xff]  ;;  %v1021_v9 = vld [vmem:[#allocation7 + $0x20] sm:$0xff]  ;;  %v1020_v10 = vld [vmem:[#allocation7 + $0x18] sm:$0xff] }
  0x26   :  { %523 = vmatpush.bf16.msra.mxu2 %v986_v22  ;;  %v1019_v11 = vld [vmem:[#allocation7 + $0x10] sm:$0xff]  ;;  %v1038_v15 = vld [vmem:[%s1221_s2] ss:$0 sm:$0xff]  ;;  %v1017_v17 = vld [vmem:[#allocation7] sm:$0xff] }
  0x27   :  { %537 = vmatpush.bf16.msra.mxu3 %v994_v23  ;;  %v1018_v16 = vld [vmem:[#allocation7 + $0x8] sm:$0xff] }
  0x28   :  { %496 = vmatpush.bf16.msra.mxu0 %v969_v24 }
  0x29   :  { %510 = vmatpush.bf16.msra.mxu1 %v977_v25 }
  0x2a   :  { %524 = vmatpush.bf16.msra.mxu2 %v985_v26 }
  0x2b   :  { %538 = vmatpush.bf16.msra.mxu3 %v993_v27 }
  0x2c   :  { %497 = vmatpush.bf16.msra.mxu0 %v968_v28 }
  0x2d   :  { %511 = vmatpush.bf16.msra.mxu1 %v976_v29 }
  0x2e   :  { %525 = vmatpush.bf16.msra.mxu2 %v984_v36 }
  0x2f   :  { %539 = vmatpush.bf16.msra.mxu3 %v992_v37  ;;  %498 = vmatmul.bf16.vlgmr.msra.gmra.mxu0 %v83_v40 }
  0x30   :  { %546 = vmatpush.bf16.msrb.mxu0 %v1007_v34  ;;  %512 = vmatmul.bf16.vlgmr.msra.gmra.mxu1 %v84_v43 }
  0x31   :  { %560 = vmatpush.bf16.msrb.mxu1 %v1015_v35  ;;  %526 = vmatmul.bf16.vlgmr.msra.gmra.mxu2 %v85_v47 }
  0x32   :  { %581 = vmatpush.bf16.msrb.mxu2 %v1016_v44  ;;  %540 = vmatmul.bf16.vlgmr.msra.gmra.mxu3 %v86_v48 }
  0x33   :  { %693 = vmatpush.bf16.msrb.mxu3 %v1024_v6 }
  0x34   :  { %547 = vmatpush.bf16.msrb.mxu0 %v1006_v45 }
  0x35   :  { %561 = vmatpush.bf16.msrb.mxu1 %v1014_v46 }
  0x37   :  { %694 = vmatpush.bf16.msrb.mxu3 %v1023_v7 }
  0x38   :  { %548 = vmatpush.bf16.msrb.mxu0 %v1005_v49 }
  0x39   :  { %562 = vmatpush.bf16.msrb.mxu1 %v1013_v50 }
  0x3b   :  { %695 = vmatpush.bf16.msrb.mxu3 %v1022_v8 }
  0x3c   :  { %549 = vmatpush.bf16.msrb.mxu0 %v1004_v51 }
  0x3d   :  { %563 = vmatpush.bf16.msrb.mxu1 %v1012_v52 }
  0x3f   :  { %696 = vmatpush.bf16.msrb.mxu3 %v1021_v9 }
  0x40   :  { %550 = vmatpush.bf16.msrb.mxu0 %v1003_v53 }
  0x41   :  { %564 = vmatpush.bf16.msrb.mxu1 %v1011_v54  ;;  %935 = vmatmul.msk.bf16.vlgmr.msrb.gmra.mxu2 %vm486_vm0, %v89_v59 }
  0x43   :  { %697 = vmatpush.bf16.msrb.mxu3 %v1020_v10 }
  0x44   :  { %551 = vmatpush.bf16.msrb.mxu0 %v1002_v57 }
  0x45   :  { %565 = vmatpush.bf16.msrb.mxu1 %v1010_v58 }
  0x47   :  { %698 = vmatpush.bf16.msrb.mxu3 %v1019_v11 }
  0x48   :  { %552 = vmatpush.bf16.msrb.mxu0 %v1001_v60 }
  0x49   :  { %566 = vmatpush.bf16.msrb.mxu1 %v1009_v61 }
  0x4b   :  { %699 = vmatpush.bf16.msrb.mxu3 %v1018_v16 }
  0x4c   :  { %553 = vmatpush.bf16.msrb.mxu0 %v1000_v62 }
  0x4d   :  { %567 = vmatpush.bf16.msrb.mxu1 %v1008_v63 }
  0x4f   :  { %554 = vmatmul.bf16.vlgmr.msrb.gmra.mxu0 %v87_v4  ;;  %700 = vmatpush.bf16.msrb.mxu3 %v1017_v17 }
  0x50   :  { %568 = vmatmul.bf16.vlgmr.msrb.gmra.mxu1 %v88_v5 }
  0xac   :  { %v499_v12 = vpop.f32.mrf.mxu0 }
  0xad   :  { %v513_v13 = vpop.f32.mrf.mxu1  ;;  %v500_v18 = vadd.f32 %v1038_v15, %v499_v12 }
  0xaf   :  { %v514_v19 = vadd.f32 %v513_v13, %v500_v18 }
  0xb4   :  { %v527_v14 = vpop.f32.mrf.mxu2  ;;  %v501_v20 = vpop.f32.mrf.mxu0 }
  0xb5   :  { %v515_v21 = vpop.f32.mrf.mxu1  ;;  %v541_v23 = vpop.f32.mrf.mxu3  ;;  %v528_v24 = vadd.f32 %v527_v14, %v514_v19  ;;  %v502_v25 = vadd.f32 %v1038_v15, %v501_v20  ;;  %v1039_v15 = vld [vmem:[%s1223_s4] ss:$0 sm:$0xff] }
  0xb7   :  { %v542_v26 = vadd.f32 %v541_v23, %v528_v24  ;;  %v516_v27 = vadd.f32 %v515_v21, %v502_v25 }
  0xbc   :  { %v529_v22 = vpop.f32.mrf.mxu2 }
  0xbd   :  { %v530_v32 = vadd.f32 %v529_v22, %v516_v27  ;;  %v543_v34 = vpop.f32.mrf.mxu3 }
  0xbf   :  { %v544_v36 = vadd.f32 %v543_v34, %v530_v32 }
  0xc4   :  { %v583_v31 = vpop.f32.mrf.mxu2 }
  0xcc   :  { %v555_v28 = vpop.f32.mrf.mxu0  ;;  %v585_v41 = vpop.f32.mrf.mxu2 }
  0xcd   :  { %v569_v29 = vpop.f32.mrf.mxu1  ;;  %v556_v30 = vadd.f32 %v555_v28, %v542_v26 }
  0xcf   :  { %v570_v33 = vadd.f32 %v569_v29, %v556_v30 }
  0xd1   :  { %v584_v35 = vadd.f32 %v583_v31, %v570_v33 }
  0xd3   :  { %1040 = vtanh.f32 %v584_v35 }
  0xd4   :  { %v557_v37 = vpop.f32.mrf.mxu0 }
  0xd5   :  { %v558_v38 = vadd.f32 %v557_v37, %v544_v36  ;;  %v571_v39 = vpop.f32.mrf.mxu1 }
  0xd7   :  { %v572_v40 = vadd.f32 %v571_v39, %v558_v38 }
  0xd9   :  { %v1041_v42 = vpop.eup %1040  ;;  %v586_v43 = vadd.f32 %v585_v41, %v572_v40 }
  0xda   :  { %v590_v44 = vmul.f32 %v1041_v42, %v1041_v42 }
  0xdb   :  { %1042 = vtanh.f32 %v586_v43 }
  0xdc   :  { %592 = vadd.xlane.f32.xlu0 %v590_v44 }
  0xe1   :  { %v1043_v45 = vpop.eup %1042 }
  0xe2   :  { %v628_v46 = vpack.c.bf16 %v1043_v45, %v1041_v42  ;;  %v591_v47 = vmul.f32 %v1043_v45, %v1043_v45 }
  0xe4   :  { %701 = vmatmul.bf16.vlgmr.msrb.gmra.mxu3 %v628_v46  ;;  %594 = vadd.xlane.f32.xlu0 %v591_v47 }
 0x14f   :  { %v593_v48 = vpop.xlane.xlu0 %592 }
 0x150   :  { %1044 = vrsqrt.f32 %v593_v48  ;;  %vm603_vm1 = vcmp.eq.f32.partialorder %v593_v48, inf  ;;  %v606_v60 = vand.u32 2147483648, %v593_v48  ;;  %vm605_vm2 = vcmp.eq.f32.partialorder %v593_v48, 0.0 }
 0x156   :  { %v1045_v49 = vpop.eup %1044 }
 0x157   :  { %v597_v50 = vmul.f32 %v1045_v49, %v593_v48  ;;  %v595_v51 = vpop.xlane.xlu0 %594 }
 0x158   :  { %1046 = vrsqrt.f32 %v595_v51  ;;  %vm615_vm3 = vcmp.eq.f32.partialorder %v595_v51, inf  ;;  %v618_v4 = vand.u32 2147483648, %v595_v51  ;;  %vm617_vm4 = vcmp.eq.f32.partialorder %v595_v51, 0.0 }
 0x159   :  { %v598_v52 = vmul.f32 %v1045_v49, %v597_v50 }
 0x15b   :  { %v599_v53 = vmul.f32 0.5, %v598_v52 }
 0x15d   :  { %v600_v54 = vsub.f32 1.5, %v599_v53 }
 0x15e   :  { %v1047_v55 = vpop.eup %1046 }
 0x15f   :  { %v609_v56 = vmul.f32 %v1047_v55, %v595_v51  ;;  %v601_v57 = vmul.f32 %v1045_v49, %v600_v54 }
 0x161   :  { %v610_v58 = vmul.f32 %v1047_v55, %v609_v56  ;;  %v602_v59 = vmul.f32 %v601_v57, %v593_v48 }
 0x163   :  { %v611_v61 = vmul.f32 0.5, %v610_v58  ;;  %v604_v62 = vsel %vm603_vm1, %v593_v48, %v602_v59 }
 0x164   :  { %v607_v63 = vsel %vm605_vm2, %v606_v60, %v604_v62 }
 0x165   :  { %v612_v0 = vsub.f32 1.5, %v611_v61  ;;  %v622_v1 = vadd.f32 1e-08, %v607_v63  ;;  %v620_v10 = vmin.f32 %v607_v63, 0.9 }
 0x167   :  { %v613_v2 = vmul.f32 %v1047_v55, %v612_v0  ;;  %1048 = vrcp.f32 %v622_v1  ;;  %v702_v7 = vpop.f32.mrf.mxu3 }
 0x169   :  { %v614_v3 = vmul.f32 %v613_v2, %v595_v51 }
 0x16b   :  { %v616_v5 = vsel %vm615_vm3, %v595_v51, %v614_v3 }
 0x16c   :  { %v619_v6 = vsel %vm617_vm4, %v618_v4, %v616_v5 }
 0x16d   :  { %v623_v8 = vadd.f32 1e-08, %v619_v6  ;;  %v1049_v9 = vpop.eup %1048  ;;  %v621_v12 = vmin.f32 %v619_v6, 0.9 }
 0x16e   :  { %v626_v11 = vmul.f32 %v1049_v9, %v620_v10 }
 0x16f   :  { %1050 = vrcp.f32 %v623_v8  ;;  %v704_v17 = vpop.f32.mrf.mxu3 }
 0x170   :  { %v707_v14 = vmul.f32 %v702_v7, %v626_v11 }
 0x172   :  { %v713_v19 = vadd.f32 %v1039_v15, %v707_v14 }
 0x175   :  { %v1051_v13 = vpop.eup %1050 }
 0x176   :  { %v627_v16 = vmul.f32 %v1051_v13, %v621_v12 }
 0x178   :  { %v708_v18 = vmul.f32 %v704_v17, %v627_v16 }
 0x17a   :  { %v714_v20 = vadd.f32 %v1039_v15, %v708_v18 }
 0x17c   :  { %v1028_v21 = vpack.c.bf16 %v714_v20, %v713_v19 }
 0x17e   :  { %1029 = vst [vmem:[#allocation8] sm:$0xff] %v1028_v21  }
 0x17f   :  { %731 = dma.vmem_to_hbm [thread:$0]  %s724_s13, 128, %s726_s16, [#allocation4], %s1155_s26, %s1155_s26, %s1156_s27  }
 0x180   :  { %1152 = dma.done.wait [#allocation4], 128  }
 0x181   :  { %1153 = vsyncadd [#allocation4], 4294967168 }
 0x182   :  { %736 = vsyncpa [#allocation3], 1 }
 0x183   :  { %737 = vsyncpa [#allocation6], 1 }
 0x184   :  { %738 = vsyncpa [#allocation4], 1 }

// kernel: tpu_custom_call.1
= control target key start
LH: loop header
LB: loop body
LE: loop exit
PB: predicated region body
PF: predicated region fallthrough
CT: control target
= control target key end

     0   :  { %10 = vsyncpa [#allocation3], 0  ;;  %s1219_s0 = inlined_call_operand.hbm [shape: f32[16,784], index: 0, kind: input, shape index: {}]   ;;  %s1220_s1 = inlined_call_operand.hbm [shape: bf16[784,128], index: 1, kind: input, shape index: {}]   ;;  %s1221_s2 = inlined_call_operand.vmem [shape: f32[1,128], index: 2, kind: input, shape index: {}]   ;;  %s1222_s3 = inlined_call_operand.hbm [shape: bf16[128,128], index: 3, kind: input, shape index: {}]   ;;  %s1223_s4 = inlined_call_operand.vmem [shape: f32[1,128], index: 4, kind: input, shape index: {}]   ;;  %s1224_s5 = inlined_call_operand.hbm [shape: bf16[16,128], index: 5, kind: output, shape index: {}]  }
   0x1   :  { %11 = vsyncpa [#allocation6], 0  ;;  %s30_s20 = sshll.u32 %s1220_s1, 4  ;;  %s31_s20 = int_to_ptr.hbm [resolvable:$true] %s30_s20 }
   0x2   :  { %12 = vsyncpa [#allocation4], 0  ;;  %s1154_s21 = smov [#allocation5]   ;;  %s17_s25 = sshll.u32 %s1219_s0, 4  ;;  %s18_s25 = int_to_ptr.hbm [resolvable:$true] %s17_s25 }
   0x3   :  { %s32_s22 = sshll.u32 %s1154_s21, 4  ;;  %s1155_s26 = smov 64   ;;  %s33_s22 = int_to_ptr.vmem [resolvable:$true] %s32_s22 }
   0x4   :  { %s1156_s27 = smov 4   ;;  %s1157_s28 = smov [#allocation2]  }
   0x5   :  { %38 = dma.hbm_to_vmem [thread:$0]  %s31_s20, 6272, %s33_s22, [#allocation6], %s1155_s26, %s1155_s26, %s1156_s27  }
   0x6   :  { %s19_s29 = sshll.u32 %s1157_s28, 4  ;;  %s1158_s1 = smov 896   ;;  %s20_s29 = int_to_ptr.vmem [resolvable:$true] %s19_s29 }
   0x7   :  { %s1159_s30 = smov 56   ;;  %s45_s8 = sshll.u32 %s1222_s3, 4  ;;  %s46_s8 = int_to_ptr.hbm [resolvable:$true] %s45_s8 }
   0x8   :  { %25 = dma.hbm_to_vmem [thread:$0]  %s18_s25, 1792, %s20_s29, [#allocation3], %s1158_s1, %s1158_s1, %s1159_s30  }
   0x9   :  { %s1160_s9 = smov [#allocation7]  }
   0xa   :  { %s47_s0 = sshll.u32 %s1160_s9, 4  ;;  %s48_s0 = int_to_ptr.vmem [resolvable:$true] %s47_s0 }
   0xb   :  { %53 = dma.hbm_to_vmem [thread:$0]  %s46_s8, 1024, %s48_s0, [#allocation6], %s1155_s26, %s1155_s26, %s1156_s27  }
   0xc   :  { %1148 = dma.done.wait [#allocation3], 1792  }
   0xd   :  { %1149 = vsyncadd [#allocation3], 4294965504 }
   0xe   :  { %1150 = dma.done.wait [#allocation6], 7296  }
   0xf   :  { %1151 = vsyncadd [#allocation6], 4294960000  ;;  %v975_v0 = vld [vmem:[#allocation5 + $0x38] sm:$0xff]  ;;  %v974_v4 = vld [vmem:[#allocation5 + $0x30] sm:$0xff]  ;;  %vm486_vm0 = vcmask 130048   ;;  %s1161_s12 = smov [#allocation8]  }
  0x10   :  { %v983_v1 = vld [vmem:[#allocation5 + $0x78] sm:$0xff]  ;;  %490 = vmatpush.bf16.msra.mxu0 %v975_v0  ;;  %v982_v5 = vld [vmem:[#allocation5 + $0x70] sm:$0xff]  ;;  %v973_v8 = vld [vmem:[#allocation5 + $0x28] sm:$0xff]  ;;  %s723_s13 = sshll.u32 %s1161_s12, 4  ;;  %s725_s16 = sshll.u32 %s1224_s5, 4  ;;  %s724_s13 = int_to_ptr.vmem [resolvable:$true] %s723_s13  ;;  %s726_s16 = int_to_ptr.hbm [resolvable:$true] %s725_s16 }
  0x11   :  { %v991_v2 = vld [vmem:[#allocation5 + $0xb8] sm:$0xff]  ;;  %504 = vmatpush.bf16.msra.mxu1 %v983_v1  ;;  %v990_v6 = vld [vmem:[#allocation5 + $0xb0] sm:$0xff]  ;;  %v981_v9 = vld [vmem:[#allocation5 + $0x68] sm:$0xff] }
  0x12   :  { %v999_v3 = vld [vmem:[#allocation5 + $0xf8] sm:$0xff]  ;;  %518 = vmatpush.bf16.msra.mxu2 %v991_v2  ;;  %v998_v7 = vld [vmem:[#allocation5 + $0xf0] sm:$0xff]  ;;  %v989_v10 = vld [vmem:[#allocation5 + $0xa8] sm:$0xff] }
  0x13   :  { %532 = vmatpush.bf16.msra.mxu3 %v999_v3  ;;  %v997_v11 = vld [vmem:[#allocation5 + $0xe8] sm:$0xff]  ;;  %v972_v12 = vld [vmem:[#allocation5 + $0x20] sm:$0xff]  ;;  %v971_v16 = vld [vmem:[#allocation5 + $0x18] sm:$0xff] }
  0x14   :  { %491 = vmatpush.bf16.msra.mxu0 %v974_v4  ;;  %v980_v13 = vld [vmem:[#allocation5 + $0x60] sm:$0xff]  ;;  %v979_v17 = vld [vmem:[#allocation5 + $0x58] sm:$0xff]  ;;  %v970_v20 = vld [vmem:[#allocation5 + $0x10] sm:$0xff] }
  0x15   :  { %505 = vmatpush.bf16.msra.mxu1 %v982_v5  ;;  %v988_v14 = vld [vmem:[#allocation5 + $0xa0] sm:$0xff]  ;;  %v987_v18 = vld [vmem:[#allocation5 + $0x98] sm:$0xff]  ;;  %v978_v21 = vld [vmem:[#allocation5 + $0x50] sm:$0xff] }
  0x16   :  { %519 = vmatpush.bf16.msra.mxu2 %v990_v6  ;;  %v996_v15 = vld [vmem:[#allocation5 + $0xe0] sm:$0xff]  ;;  %v995_v19 = vld [vmem:[#allocation5 + $0xd8] sm:$0xff]  ;;  %v986_v22 = vld [vmem:[#allocation5 + $0x90] sm:$0xff] }
  0x17   :  { %533 = vmatpush.bf16.msra.mxu3 %v998_v7  ;;  %v994_v23 = vld [vmem:[#allocation5 + $0xd0] sm:$0xff]  ;;  %v969_v24 = vld [vmem:[#allocation5 + $0x8] sm:$0xff]  ;;  %v968_v28 = vld [vmem:[#allocation5] sm:$0xff] }
  0x18   :  { %492 = vmatpush.bf16.msra.mxu0 %v973_v8  ;;  %v977_v25 = vld [vmem:[#allocation5 + $0x48] sm:$0xff]  ;;  %v976_v29 = vld [vmem:[#allocation5 + $0x40] sm:$0xff]  ;;  %v69_v30 = vld [vmem:[#allocation2] sm:$0xff] }
  0x19   :  { %506 = vmatpush.bf16.msra.mxu1 %v981_v9  ;;  %v985_v26 = vld [vmem:[#allocation5 + $0x88] sm:$0xff]  ;;  %v70_v32 = vld [vmem:[#allocation2 + $0x8] sm:$0xff]  ;;  %v77_v33 = vld [vmem:[#allocation2 + $0x40] sm:$0xff] }
  0x1a   :  { %520 = vmatpush.bf16.msra.mxu2 %v989_v10  ;;  %v993_v27 = vld [vmem:[#allocation5 + $0xc8] sm:$0xff]  ;;  %v1007_v34 = vld [vmem:[#allocation5 + $0x138] sm:$0xff]  ;;  %v984_v36 = vld [vmem:[#allocation5 + $0x80] sm:$0xff]  ;;  %v84_v43 = vpack.c.bf16 %v77_v33, %v70_v32 }
  0x1b   :  { %534 = vmatpush.bf16.msra.mxu3 %v997_v11  ;;  %v76_v31 = vld [vmem:[#allocation2 + $0x38] sm:$0xff]  ;;  %v1015_v35 = vld [vmem:[#allocation5 + $0x178] sm:$0xff]  ;;  %v992_v37 = vld [vmem:[#allocation5 + $0xc0] sm:$0xff] }
  0x1c   :  { %493 = vmatpush.bf16.msra.mxu0 %v972_v12  ;;  %v71_v38 = vld [vmem:[#allocation2 + $0x10] sm:$0xff]  ;;  %v78_v39 = vld [vmem:[#allocation2 + $0x48] sm:$0xff]  ;;  %v83_v40 = vpack.c.bf16 %v76_v31, %v69_v30  ;;  %v72_v41 = vld [vmem:[#allocation2 + $0x18] sm:$0xff] }
  0x1d   :  { %507 = vmatpush.bf16.msra.mxu1 %v980_v13  ;;  %v79_v42 = vld [vmem:[#allocation2 + $0x50] sm:$0xff]  ;;  %v1006_v45 = vld [vmem:[#allocation5 + $0x130] sm:$0xff]  ;;  %v85_v47 = vpack.c.bf16 %v78_v39, %v71_v38  ;;  %v1005_v49 = vld [vmem:[#allocation5 + $0x128] sm:$0xff] }
  0x1e   :  { %521 = vmatpush.bf16.msra.mxu2 %v988_v14  ;;  %v1016_v44 = vld [vmem:[#allocation5 + $0x180] sm:$0xff]  ;;  %v1014_v46 = vld [vmem:[#allocation5 + $0x170] sm:$0xff]  ;;  %v86_v48 = vpack.c.bf16 %v79_v42, %v72_v41  ;;  %v1013_v50 = vld [vmem:[#allocation5 + $0x168] sm:$0xff] }
  0x1f   :  { %535 = vmatpush.bf16.msra.mxu3 %v996_v15  ;;  %v1004_v51 = vld [vmem:[#allocation5 + $0x120] sm:$0xff]  ;;  %v1003_v53 = vld [vmem:[#allocation5 + $0x118] sm:$0xff]  ;;  %v1002_v57 = vld [vmem:[#allocation5 + $0x110] sm:$0xff] }
  0x20   :  { %494 = vmatpush.bf16.msra.mxu0 %v971_v16  ;;  %v1012_v52 = vld [vmem:[#allocation5 + $0x160] sm:$0xff]  ;;  %v1011_v54 = vld [vmem:[#allocation5 + $0x158] sm:$0xff]  ;;  %v1010_v58 = vld [vmem:[#allocation5 + $0x150] sm:$0xff] }
  0x21   :  { %508 = vmatpush.bf16.msra.mxu1 %v979_v17  ;;  %v75_v55 = vld [vmem:[#allocation2 + $0x30] sm:$0xff]  ;;  %v82_v56 = vld [vmem:[#allocation2 + $0x68] sm:$0xff]  ;;  %v1001_v60 = vld [vmem:[#allocation5 + $0x108] sm:$0xff] }
  0x22   :  { %522 = vmatpush.bf16.msra.mxu2 %v987_v18  ;;  %v89_v59 = vpack.c.bf16 %v82_v56, %v75_v55  ;;  %v1009_v61 = vld [vmem:[#allocation5 + $0x148] sm:$0xff]  ;;  %v1000_v62 = vld [vmem:[#allocation5 + $0x100] sm:$0xff]  ;;  %v73_v0 = vld [vmem:[#allocation2 + $0x20] sm:$0xff] }
  0x23   :  { %536 = vmatpush.bf16.msra.mxu3 %v995_v19  ;;  %v1008_v63 = vld [vmem:[#allocation5 + $0x140] sm:$0xff]  ;;  %v80_v1 = vld [vmem:[#allocation2 + $0x58] sm:$0xff]  ;;  %v74_v2 = vld [vmem:[#allocation2 + $0x28] sm:$0xff] }
  0x24   :  { %495 = vmatpush.bf16.msra.mxu0 %v970_v20  ;;  %v81_v3 = vld [vmem:[#allocation2 + $0x60] sm:$0xff]  ;;  %v87_v4 = vpack.c.bf16 %v80_v1, %v73_v0  ;;  %v1024_v6 = vld [vmem:[#allocation7 + $0x38] sm:$0xff]  ;;  %v1023_v7 = vld [vmem:[#allocation7 + $0x30] sm:$0xff] }
  0x25   :  { %509 = vmatpush.bf16.msra.mxu1 %v978_v21  ;;  %v88_v5 = vpack.c.bf16 %v81_v3, %v74_v2  ;;  %v1022_v8 = vld [vmem:[#allocation7 + $0x28] sm:$0xff]  ;;  %v1021_v9 = vld [vmem:[#allocation7 + $0x20] sm:$0xff]  ;;  %v1020_v10 = vld [vmem:[#allocation7 + $0x18] sm:$0xff] }
  0x26   :  { %523 = vmatpush.bf16.msra.mxu2 %v986_v22  ;;  %v1019_v11 = vld [vmem:[#allocation7 + $0x10] sm:$0xff]  ;;  %v1038_v15 = vld [vmem:[%s1221_s2] ss:$0 sm:$0xff]  ;;  %v1017_v17 = vld [vmem:[#allocation7] sm:$0xff] }
  0x27   :  { %537 = vmatpush.bf16.msra.mxu3 %v994_v23  ;;  %v1018_v16 = vld [vmem:[#allocation7 + $0x8] sm:$0xff] }
  0x28   :  { %496 = vmatpush.bf16.msra.mxu0 %v969_v24 }
  0x29   :  { %510 = vmatpush.bf16.msra.mxu1 %v977_v25 }
  0x2a   :  { %524 = vmatpush.bf16.msra.mxu2 %v985_v26 }
  0x2b   :  { %538 = vmatpush.bf16.msra.mxu3 %v993_v27 }
  0x2c   :  { %497 = vmatpush.bf16.msra.mxu0 %v968_v28 }
  0x2d   :  { %511 = vmatpush.bf16.msra.mxu1 %v976_v29 }
  0x2e   :  { %525 = vmatpush.bf16.msra.mxu2 %v984_v36 }
  0x2f   :  { %539 = vmatpush.bf16.msra.mxu3 %v992_v37  ;;  %498 = vmatmul.bf16.vlgmr.msra.gmra.mxu0 %v83_v40 }
  0x30   :  { %546 = vmatpush.bf16.msrb.mxu0 %v1007_v34  ;;  %512 = vmatmul.bf16.vlgmr.msra.gmra.mxu1 %v84_v43 }
  0x31   :  { %560 = vmatpush.bf16.msrb.mxu1 %v1015_v35  ;;  %526 = vmatmul.bf16.vlgmr.msra.gmra.mxu2 %v85_v47 }
  0x32   :  { %581 = vmatpush.bf16.msrb.mxu2 %v1016_v44  ;;  %540 = vmatmul.bf16.vlgmr.msra.gmra.mxu3 %v86_v48 }
  0x33   :  { %693 = vmatpush.bf16.msrb.mxu3 %v1024_v6 }
  0x34   :  { %547 = vmatpush.bf16.msrb.mxu0 %v1006_v45 }
  0x35   :  { %561 = vmatpush.bf16.msrb.mxu1 %v1014_v46 }
  0x37   :  { %694 = vmatpush.bf16.msrb.mxu3 %v1023_v7 }
  0x38   :  { %548 = vmatpush.bf16.msrb.mxu0 %v1005_v49 }
  0x39   :  { %562 = vmatpush.bf16.msrb.mxu1 %v1013_v50 }
  0x3b   :  { %695 = vmatpush.bf16.msrb.mxu3 %v1022_v8 }
  0x3c   :  { %549 = vmatpush.bf16.msrb.mxu0 %v1004_v51 }
  0x3d   :  { %563 = vmatpush.bf16.msrb.mxu1 %v1012_v52 }
  0x3f   :  { %696 = vmatpush.bf16.msrb.mxu3 %v1021_v9 }
  0x40   :  { %550 = vmatpush.bf16.msrb.mxu0 %v1003_v53 }
  0x41   :  { %564 = vmatpush.bf16.msrb.mxu1 %v1011_v54  ;;  %935 = vmatmul.msk.bf16.vlgmr.msrb.gmra.mxu2 %vm486_vm0, %v89_v59 }
  0x43   :  { %697 = vmatpush.bf16.msrb.mxu3 %v1020_v10 }
  0x44   :  { %551 = vmatpush.bf16.msrb.mxu0 %v1002_v57 }
  0x45   :  { %565 = vmatpush.bf16.msrb.mxu1 %v1010_v58 }
  0x47   :  { %698 = vmatpush.bf16.msrb.mxu3 %v1019_v11 }
  0x48   :  { %552 = vmatpush.bf16.msrb.mxu0 %v1001_v60 }
  0x49   :  { %566 = vmatpush.bf16.msrb.mxu1 %v1009_v61 }
  0x4b   :  { %699 = vmatpush.bf16.msrb.mxu3 %v1018_v16 }
  0x4c   :  { %553 = vmatpush.bf16.msrb.mxu0 %v1000_v62 }
  0x4d   :  { %567 = vmatpush.bf16.msrb.mxu1 %v1008_v63 }
  0x4f   :  { %554 = vmatmul.bf16.vlgmr.msrb.gmra.mxu0 %v87_v4  ;;  %700 = vmatpush.bf16.msrb.mxu3 %v1017_v17 }
  0x50   :  { %568 = vmatmul.bf16.vlgmr.msrb.gmra.mxu1 %v88_v5 }
  0xac   :  { %v499_v12 = vpop.f32.mrf.mxu0 }
  0xad   :  { %v513_v13 = vpop.f32.mrf.mxu1  ;;  %v500_v18 = vadd.f32 %v1038_v15, %v499_v12 }
  0xaf   :  { %v514_v19 = vadd.f32 %v513_v13, %v500_v18 }
  0xb4   :  { %v527_v14 = vpop.f32.mrf.mxu2  ;;  %v501_v20 = vpop.f32.mrf.mxu0 }
  0xb5   :  { %v515_v21 = vpop.f32.mrf.mxu1  ;;  %v541_v23 = vpop.f32.mrf.mxu3  ;;  %v528_v24 = vadd.f32 %v527_v14, %v514_v19  ;;  %v502_v25 = vadd.f32 %v1038_v15, %v501_v20  ;;  %v1039_v15 = vld [vmem:[%s1223_s4] ss:$0 sm:$0xff] }
  0xb7   :  { %v542_v26 = vadd.f32 %v541_v23, %v528_v24  ;;  %v516_v27 = vadd.f32 %v515_v21, %v502_v25 }
  0xbc   :  { %v529_v22 = vpop.f32.mrf.mxu2 }
  0xbd   :  { %v530_v32 = vadd.f32 %v529_v22, %v516_v27  ;;  %v543_v34 = vpop.f32.mrf.mxu3 }
  0xbf   :  { %v544_v36 = vadd.f32 %v543_v34, %v530_v32 }
  0xc4   :  { %v583_v31 = vpop.f32.mrf.mxu2 }
  0xcc   :  { %v555_v28 = vpop.f32.mrf.mxu0  ;;  %v585_v41 = vpop.f32.mrf.mxu2 }
  0xcd   :  { %v569_v29 = vpop.f32.mrf.mxu1  ;;  %v556_v30 = vadd.f32 %v555_v28, %v542_v26 }
  0xcf   :  { %v570_v33 = vadd.f32 %v569_v29, %v556_v30 }
  0xd1   :  { %v584_v35 = vadd.f32 %v583_v31, %v570_v33 }
  0xd3   :  { %1040 = vtanh.f32 %v584_v35 }
  0xd4   :  { %v557_v37 = vpop.f32.mrf.mxu0 }
  0xd5   :  { %v558_v38 = vadd.f32 %v557_v37, %v544_v36  ;;  %v571_v39 = vpop.f32.mrf.mxu1 }
  0xd7   :  { %v572_v40 = vadd.f32 %v571_v39, %v558_v38 }
  0xd9   :  { %v1041_v42 = vpop.eup %1040  ;;  %v586_v43 = vadd.f32 %v585_v41, %v572_v40 }
  0xda   :  { %v590_v44 = vmul.f32 %v1041_v42, %v1041_v42 }
  0xdb   :  { %1042 = vtanh.f32 %v586_v43 }
  0xdc   :  { %592 = vadd.xlane.f32.xlu0 %v590_v44 }
  0xe1   :  { %v1043_v45 = vpop.eup %1042 }
  0xe2   :  { %v628_v46 = vpack.c.bf16 %v1043_v45, %v1041_v42  ;;  %v591_v47 = vmul.f32 %v1043_v45, %v1043_v45 }
  0xe4   :  { %701 = vmatmul.bf16.vlgmr.msrb.gmra.mxu3 %v628_v46  ;;  %594 = vadd.xlane.f32.xlu0 %v591_v47 }
 0x14f   :  { %v593_v48 = vpop.xlane.xlu0 %592 }
 0x150   :  { %1044 = vrsqrt.f32 %v593_v48  ;;  %vm603_vm1 = vcmp.eq.f32.partialorder %v593_v48, inf  ;;  %v606_v60 = vand.u32 2147483648, %v593_v48  ;;  %vm605_vm2 = vcmp.eq.f32.partialorder %v593_v48, 0.0 }
 0x156   :  { %v1045_v49 = vpop.eup %1044 }
 0x157   :  { %v597_v50 = vmul.f32 %v1045_v49, %v593_v48  ;;  %v595_v51 = vpop.xlane.xlu0 %594 }
 0x158   :  { %1046 = vrsqrt.f32 %v595_v51  ;;  %vm615_vm3 = vcmp.eq.f32.partialorder %v595_v51, inf  ;;  %v618_v4 = vand.u32 2147483648, %v595_v51  ;;  %vm617_vm4 = vcmp.eq.f32.partialorder %v595_v51, 0.0 }
 0x159   :  { %v598_v52 = vmul.f32 %v1045_v49, %v597_v50 }
 0x15b   :  { %v599_v53 = vmul.f32 0.5, %v598_v52 }
 0x15d   :  { %v600_v54 = vsub.f32 1.5, %v599_v53 }
 0x15e   :  { %v1047_v55 = vpop.eup %1046 }
 0x15f   :  { %v609_v56 = vmul.f32 %v1047_v55, %v595_v51  ;;  %v601_v57 = vmul.f32 %v1045_v49, %v600_v54 }
 0x161   :  { %v610_v58 = vmul.f32 %v1047_v55, %v609_v56  ;;  %v602_v59 = vmul.f32 %v601_v57, %v593_v48 }
 0x163   :  { %v611_v61 = vmul.f32 0.5, %v610_v58  ;;  %v604_v62 = vsel %vm603_vm1, %v593_v48, %v602_v59 }
 0x164   :  { %v607_v63 = vsel %vm605_vm2, %v606_v60, %v604_v62 }
 0x165   :  { %v612_v0 = vsub.f32 1.5, %v611_v61  ;;  %v622_v1 = vadd.f32 1e-08, %v607_v63  ;;  %v620_v10 = vmin.f32 %v607_v63, 0.9 }
 0x167   :  { %v613_v2 = vmul.f32 %v1047_v55, %v612_v0  ;;  %1048 = vrcp.f32 %v622_v1  ;;  %v702_v7 = vpop.f32.mrf.mxu3 }
 0x169   :  { %v614_v3 = vmul.f32 %v613_v2, %v595_v51 }
 0x16b   :  { %v616_v5 = vsel %vm615_vm3, %v595_v51, %v614_v3 }
 0x16c   :  { %v619_v6 = vsel %vm617_vm4, %v618_v4, %v616_v5 }
 0x16d   :  { %v623_v8 = vadd.f32 1e-08, %v619_v6  ;;  %v1049_v9 = vpop.eup %1048  ;;  %v621_v12 = vmin.f32 %v619_v6, 0.9 }
 0x16e   :  { %v626_v11 = vmul.f32 %v1049_v9, %v620_v10 }
 0x16f   :  { %1050 = vrcp.f32 %v623_v8  ;;  %v704_v17 = vpop.f32.mrf.mxu3 }
 0x170   :  { %v707_v14 = vmul.f32 %v702_v7, %v626_v11 }
 0x172   :  { %v713_v19 = vadd.f32 %v1039_v15, %v707_v14 }
 0x175   :  { %v1051_v13 = vpop.eup %1050 }
 0x176   :  { %v627_v16 = vmul.f32 %v1051_v13, %v621_v12 }
 0x178   :  { %v708_v18 = vmul.f32 %v704_v17, %v627_v16 }
 0x17a   :  { %v714_v20 = vadd.f32 %v1039_v15, %v708_v18 }
 0x17c   :  { %v1028_v21 = vpack.c.bf16 %v714_v20, %v713_v19 }
 0x17e   :  { %1029 = vst [vmem:[#allocation8] sm:$0xff] %v1028_v21  }
 0x17f   :  { %731 = dma.vmem_to_hbm [thread:$0]  %s724_s13, 128, %s726_s16, [#allocation4], %s1155_s26, %s1155_s26, %s1156_s27  }
 0x180   :  { %1152 = dma.done.wait [#allocation4], 128  }
 0x181   :  { %1153 = vsyncadd [#allocation4], 4294967168 }
 0x182   :  { %736 = vsyncpa [#allocation3], 1 }
 0x183   :  { %737 = vsyncpa [#allocation6], 1 }
 0x184   :  { %738 = vsyncpa [#allocation4], 1 }

</bundles_post_ra>
